<compile_context>
chip_gen: v7x
topology: tpu7x:2x2x1
jax: 0.10.0
libtpu: 0.0.40
codegen_flags: <defaults>
</compile_context>

<pallas_src>
import jax
import jax.numpy as jnp
from jax.experimental import pallas as pl
from jax.experimental.pallas import tpu as pltpu

# cfg.MODEL.ROI_HEADS.* (synthetic, deterministic)
NUM_CLASSES = 20
IOU_THRESH_LO = 0.3   # cfg.MODEL.ROI_HEADS.IOU_THRESHOLDS = [0.3, 0.5]
IOU_THRESH_HI = 0.5
BATCH_SIZE_PER_IMAGE = 64        # host-side subsample_labels only (not in kernel)
POSITIVE_FRACTION = 0.25         # host-side subsample_labels only (not in kernel)

# ---- packing constants (plain Python ints: never captured jnp scalars) ----
# in-kernel argmax/gather packing: code = (gt_row << 8) | gt_class
_CODE_SHIFT = 8
_CODE_BASE = 1 << _CODE_SHIFT            # must exceed NUM_CLASSES
_SENTINEL = 1 << 30                      # > any valid code
# output packing: (matched_idx << 10) | ((label + 1) << 8) | (class + 1)
_OUT_IDX_SHIFT = 10
_OUT_LBL_SHIFT = 8
_OUT_CLS_MASK = _CODE_BASE - 1           # 0xFF


def _round_up(x, m):
    return (x + m - 1) // m * m


def _pick_batch_group(batch, n_tiles):
    """Images per grid step. Keep >=2 grid work-units when possible (v7x has
    2 TensorCores); otherwise fold the whole batch into one step (v5e/v6e)."""
    if batch == 1:
        return 1
    if n_tiles >= 2:
        return batch                      # proposal axis already gives >=2 steps
    for bg in range(batch // 2, 0, -1):   # largest divisor of batch <= batch//2
        if batch % bg == 0:
            return bg
    return 1


def roi_match_kernel(gt_ref, prop_ref, out_ref):
    """Fused pairwise-IoU + Matcher + gt-class assignment for a (BG, TN) tile.

    gt_ref:   (BG, M, 5) f32  gt boxes XYXY in cols 0..3, gt class in col 4
    prop_ref: (BG, 4, TN) f32 proposal boxes, coordinate-major XYXY
    out_ref:  (BG, 1, TN) i32 packed (idx << 10) | ((label+1) << 8) | (cls+1)
    """
    gt = gt_ref[...]            # (BG, M, 5)
    pt = prop_ref[...]          # (BG, 4, TN)

    gx1 = gt[:, :, 0:1]
    gy1 = gt[:, :, 1:2]
    gx2 = gt[:, :, 2:3]
    gy2 = gt[:, :, 3:4]
    gcls = gt[:, :, 4:5].astype(jnp.int32)          # (BG, M, 1) exact (small ints)

    px1 = pt[:, 0:1, :]
    py1 = pt[:, 1:2, :]
    px2 = pt[:, 2:3, :]
    py2 = pt[:, 3:4, :]                              # (BG, 1, TN)

    # ---- pairwise_iou (stays in VMEM; never written back to HBM) ----
    iw = jnp.maximum(jnp.minimum(gx2, px2) - jnp.maximum(gx1, px1), 0.0)   # (BG,M,TN)
    ih = jnp.maximum(jnp.minimum(gy2, py2) - jnp.maximum(gy1, py1), 0.0)
    inter = iw * ih
    area_g = (gx2 - gx1) * (gy2 - gy1)               # (BG, M, 1)
    area_p = (px2 - px1) * (py2 - py1)               # (BG, 1, TN)
    union = area_g + area_p - inter
    # Exact divide (not approx reciprocal): the 0.3/0.5 threshold compares must
    # match the PyTorch Matcher.
    iou = jnp.where(inter > 0.0, inter / union, 0.0)

    # ---- Matcher (allow_low_quality_matches=False) ----
    max_vals = jnp.max(iou, axis=1, keepdims=True)   # (BG, 1, TN)
    is_max = iou == max_vals
    # Single packed min-reduce: lowest matching gt row (torch.max tie rule)
    # AND its class, in one cross-sublane pass.
    row = jax.lax.broadcasted_iota(jnp.int32, iou.shape, 1)                 # (BG,M,TN)
    code = (row << _CODE_SHIFT) | gcls                                      # (BG,M,TN)
    packed = jnp.min(jnp.where(is_max, code, _SENTINEL), axis=1, keepdims=True)
    matched_idxs = packed >> _CODE_SHIFT                                    # (BG,1,TN)
    matched_cls = packed & (_CODE_BASE - 1)                                 # (BG,1,TN)

    labels = jnp.where(
        max_vals >= IOU_THRESH_HI, 1,
        jnp.where(max_vals >= IOU_THRESH_LO, -1, 0),
    ).astype(jnp.int32)

    # ---- _sample_proposals class assignment ----
    cls = jnp.where(labels == 0, NUM_CLASSES,
                    jnp.where(labels == -1, -1, matched_cls)).astype(jnp.int32)

    # ---- single packed full-tile store ----
    out_ref[...] = ((matched_idxs << _OUT_IDX_SHIFT)
                    | ((labels + 1) << _OUT_LBL_SHIFT)
                    | (cls + 1)).astype(jnp.int32)


@jax.jit
def roi_heads_label_proposals(gt_boxes, proposal_boxes_cm, gt_classes):
    """Batched box matching for `label_and_sample_proposals`.

    gt_boxes:          (B, M, 4) f32  ground-truth boxes, XYXY
    proposal_boxes_cm: (B, 4, N) f32  proposal boxes, coordinate-major XYXY
    gt_classes:        (B, M)    i32

    Returns:
      matched_idxs        (B, N) i32  best-matched gt index per proposal
      matched_labels      (B, N) i32  matcher label per proposal (1 / -1 / 0)
      proposal_gt_classes (B, N) i32  class (fg class / NUM_CLASSES / -1)
    """
    B, M, _ = gt_boxes.shape
    N = proposal_boxes_cm.shape[-1]

    # static packing-safety asserts (see correctness review)
    assert 0 <= NUM_CLASSES <= 254, "class packing needs NUM_CLASSES <= 254"
    assert M <= (1 << 21), "matched-idx packing needs M <= 2^21"

    # Lane-dense tiling over the proposal axis; large tiles (kernel is
    # grid-step-overhead bound). Padding zeros = degenerate boxes -> IoU 0 ->
    # background; trimmed below.
    # TODO(synk): upstream proposal producers should emit lane-padded slabs so
    # this pad (and the final trim) fuse away.
    tn = min(2048, _round_up(N, 128))
    n_pad = _round_up(N, tn)
    n_tiles = n_pad // tn
    prop = proposal_boxes_cm.astype(jnp.float32)
    if n_pad != N:
        prop = jnp.pad(prop, ((0, 0), (0, 0), (0, n_pad - N)))

    # gt class rides as a 5th column of the gt slab -> one input stream only.
    gt_aug = jnp.concatenate(
        [gt_boxes.astype(jnp.float32), gt_classes.astype(jnp.float32)[..., None]],
        axis=-1)                                                            # (B, M, 5)

    bg = _pick_batch_group(B, n_tiles)
    grid = (B // bg, n_tiles)

    out = pl.pallas_call(
        roi_match_kernel,
        out_shape=jax.ShapeDtypeStruct((B, 1, n_pad), jnp.int32),
        grid_spec=pltpu.PrefetchScalarGridSpec(
            num_scalar_prefetch=0,
            grid=grid,
            in_specs=[
                pl.BlockSpec((bg, M, 5), lambda b, j: (b, 0, 0)),
                pl.BlockSpec((bg, 4, tn), lambda b, j: (b, 0, j)),
            ],
            out_specs=pl.BlockSpec((bg, 1, tn), lambda b, j: (b, 0, j)),
        ),
        compiler_params=pltpu.CompilerParams(
            dimension_semantics=("parallel", "parallel"),
        ),
    )(gt_aug, prop)

    # TODO(synk): subsample_labels (random fg/bg subsampling with data-dependent
    # output counts), the no-GT (M == 0) all-background fallback, and per-image
    # Instances / event-storage bookkeeping are host logic left outside the kernel.
    packed = out[:, 0, :N]
    matched_idxs = packed >> _OUT_IDX_SHIFT
    matched_labels = ((packed >> _OUT_LBL_SHIFT) & 3) - 1
    proposal_classes = (packed & _OUT_CLS_MASK) - 1
    return matched_idxs, matched_labels, proposal_classes


def _reference(gt_boxes, prop_cm, gt_classes):
    """Pure-JAX reference: pairwise_iou + Matcher + class assignment."""
    gx1, gy1, gx2, gy2 = [gt_boxes[..., i][:, :, None] for i in range(4)]   # (B, M, 1)
    px1, py1, px2, py2 = [prop_cm[:, i, :][:, None, :] for i in range(4)]   # (B, 1, N)
    iw = jnp.maximum(jnp.minimum(gx2, px2) - jnp.maximum(gx1, px1), 0.0)
    ih = jnp.maximum(jnp.minimum(gy2, py2) - jnp.maximum(gy1, py1), 0.0)
    inter = iw * ih
    union = (gx2 - gx1) * (gy2 - gy1) + (px2 - px1) * (py2 - py1) - inter
    iou = jnp.where(inter > 0.0, inter / union, 0.0)                        # (B, M, N)
    max_vals = jnp.max(iou, axis=1)                                          # (B, N)
    is_max = iou == max_vals[:, None, :]
    M = gt_boxes.shape[1]
    row_ids = jnp.arange(M, dtype=jnp.int32)[None, :, None]
    matched_idxs = jnp.min(jnp.where(is_max, row_ids, M), axis=1).astype(jnp.int32)
    labels = jnp.where(max_vals >= IOU_THRESH_HI, 1,
                       jnp.where(max_vals >= IOU_THRESH_LO, -1, 0)).astype(jnp.int32)
    gathered = jnp.take_along_axis(gt_classes.astype(jnp.int32), matched_idxs, axis=1)
    cls = jnp.where(labels == 0, NUM_CLASSES,
                    jnp.where(labels == -1, -1, gathered)).astype(jnp.int32)
    return matched_idxs, labels, cls


if __name__ == "__main__":
    key = jax.random.PRNGKey(0)
    k1, k2, k3, k4, k5 = jax.random.split(key, 5)

    B = 2     # images
    M = 8     # ground-truth boxes per image
    N = 200   # proposals per image (deliberately not lane-aligned)

    # deterministic synthetic XYXY ground-truth boxes
    gt_xy = jax.random.uniform(k1, (B, M, 2), minval=0.0, maxval=50.0)
    gt_wh = jax.random.uniform(k2, (B, M, 2), minval=5.0, maxval=30.0)
    gt_boxes = jnp.concatenate([gt_xy, gt_xy + gt_wh], axis=-1)             # (B, M, 4)

    # proposals produced coordinate-major (B, 4, N): rows x1, y1, x2, y2
    pr_xy = jax.random.uniform(k3, (B, 2, N), minval=0.0, maxval=60.0)
    pr_wh = jax.random.uniform(k4, (B, 2, N), minval=4.0, maxval=35.0)
    prop_cm = jnp.concatenate([pr_xy, pr_xy + pr_wh], axis=1)               # (B, 4, N)

    gt_classes = jax.random.randint(k5, (B, M), 0, NUM_CLASSES, dtype=jnp.int32)

    idx, lbl, cls = roi_heads_label_proposals(gt_boxes, prop_cm, gt_classes)
    jax.block_until_ready((idx, lbl, cls))

    # shape / dtype / range sanity
    assert idx.shape == (B, N) and idx.dtype == jnp.int32
    assert lbl.shape == (B, N) and lbl.dtype == jnp.int32
    assert cls.shape == (B, N) and cls.dtype == jnp.int32
    assert bool(jnp.all((idx >= 0) & (idx < M)))
    assert bool(jnp.all((lbl >= -1) & (lbl <= 1)))
    assert bool(jnp.all((cls >= -1) & (cls <= NUM_CLASSES)))

    # compare against a pure-JAX reference of the same math
    ridx, rlbl, rcls = _reference(gt_boxes, prop_cm, gt_classes)
    assert bool(jnp.all(idx == ridx)), "matched_idxs mismatch vs reference"
    assert bool(jnp.all(lbl == rlbl)), "matched_labels mismatch vs reference"
    assert bool(jnp.all(cls == rcls)), "proposal gt_classes mismatch vs reference"

    print("KERNEL_OK")
</pallas_src>

<mosaic_0001>
module attributes {stable_mosaic.version = 11 : i64} {
  func.func @roi_match_kernel(%arg0: i32, %arg1: i32, %arg2: memref<1x8x5xf32, #tpu.memory_space<vmem>>, %arg3: memref<1x4x256xf32, #tpu.memory_space<vmem>>, %arg4: memref<1x1x256xi32, #tpu.memory_space<vmem>>) attributes {dimension_semantics = [#tpu.dimension_semantics<parallel>, #tpu.dimension_semantics<parallel>], iteration_bounds = array<i64: 2, 1>, scalar_prefetch = 0 : i64, scratch_operands = 0 : i64, tpu.core_type = #tpu.core_type<tc>, window_params = [{transform_indices = @transform_0, window_bounds = array<i64: 1, 8, 5>}, {transform_indices = @transform_1, window_bounds = array<i64: 1, 4, 256>}, {transform_indices = @transform_2, window_bounds = array<i64: 1, 1, 256>}]} {
    %c0 = arith.constant 0 : index
    %c0_0 = arith.constant 0 : index
    %c0_1 = arith.constant 0 : index
    %0 = vector.load %arg2[%c0, %c0_0, %c0_1] : memref<1x8x5xf32, #tpu.memory_space<vmem>>, vector<1x8x5xf32>
    %c0_2 = arith.constant 0 : index
    %c0_3 = arith.constant 0 : index
    %c0_4 = arith.constant 0 : index
    %1 = vector.load %arg3[%c0_2, %c0_3, %c0_4] : memref<1x4x256xf32, #tpu.memory_space<vmem>>, vector<1x4x256xf32>
    %2 = vector.extract_strided_slice %0 {offsets = [0, 0, 0], sizes = [1, 8, 1], strides = [1, 1, 1]} : vector<1x8x5xf32> to vector<1x8x1xf32>
    %3 = vector.extract_strided_slice %0 {offsets = [0, 0, 1], sizes = [1, 8, 1], strides = [1, 1, 1]} : vector<1x8x5xf32> to vector<1x8x1xf32>
    %4 = vector.extract_strided_slice %0 {offsets = [0, 0, 2], sizes = [1, 8, 1], strides = [1, 1, 1]} : vector<1x8x5xf32> to vector<1x8x1xf32>
    %5 = vector.extract_strided_slice %0 {offsets = [0, 0, 3], sizes = [1, 8, 1], strides = [1, 1, 1]} : vector<1x8x5xf32> to vector<1x8x1xf32>
    %6 = vector.extract_strided_slice %0 {offsets = [0, 0, 4], sizes = [1, 8, 1], strides = [1, 1, 1]} : vector<1x8x5xf32> to vector<1x8x1xf32>
    %7 = arith.fptosi %6 : vector<1x8x1xf32> to vector<1x8x1xi32>
    %8 = vector.extract_strided_slice %1 {offsets = [0, 0, 0], sizes = [1, 1, 256], strides = [1, 1, 1]} : vector<1x4x256xf32> to vector<1x1x256xf32>
    %9 = vector.extract_strided_slice %1 {offsets = [0, 1, 0], sizes = [1, 1, 256], strides = [1, 1, 1]} : vector<1x4x256xf32> to vector<1x1x256xf32>
    %10 = vector.extract_strided_slice %1 {offsets = [0, 2, 0], sizes = [1, 1, 256], strides = [1, 1, 1]} : vector<1x4x256xf32> to vector<1x1x256xf32>
    %11 = vector.extract_strided_slice %1 {offsets = [0, 3, 0], sizes = [1, 1, 256], strides = [1, 1, 1]} : vector<1x4x256xf32> to vector<1x1x256xf32>
    %12 = vector.broadcast %4 : vector<1x8x1xf32> to vector<1x8x256xf32>
    %13 = vector.broadcast %10 : vector<1x1x256xf32> to vector<1x8x256xf32>
    %14 = arith.minimumf %12, %13 : vector<1x8x256xf32>
    %15 = vector.broadcast %2 : vector<1x8x1xf32> to vector<1x8x256xf32>
    %16 = vector.broadcast %8 : vector<1x1x256xf32> to vector<1x8x256xf32>
    %17 = arith.maximumf %15, %16 : vector<1x8x256xf32>
    %18 = arith.subf %14, %17 : vector<1x8x256xf32>
    %cst = arith.constant 0.000000e+00 : f32
    %19 = vector.broadcast %cst : f32 to vector<1x8x256xf32>
    %20 = arith.maximumf %18, %19 : vector<1x8x256xf32>
    %21 = vector.broadcast %5 : vector<1x8x1xf32> to vector<1x8x256xf32>
    %22 = vector.broadcast %11 : vector<1x1x256xf32> to vector<1x8x256xf32>
    %23 = arith.minimumf %21, %22 : vector<1x8x256xf32>
    %24 = vector.broadcast %3 : vector<1x8x1xf32> to vector<1x8x256xf32>
    %25 = vector.broadcast %9 : vector<1x1x256xf32> to vector<1x8x256xf32>
    %26 = arith.maximumf %24, %25 : vector<1x8x256xf32>
    %27 = arith.subf %23, %26 : vector<1x8x256xf32>
    %cst_5 = arith.constant 0.000000e+00 : f32
    %28 = vector.broadcast %cst_5 : f32 to vector<1x8x256xf32>
    %29 = arith.maximumf %27, %28 : vector<1x8x256xf32>
    %30 = arith.mulf %20, %29 : vector<1x8x256xf32>
    %31 = arith.subf %4, %2 : vector<1x8x1xf32>
    %32 = arith.subf %5, %3 : vector<1x8x1xf32>
    %33 = arith.mulf %31, %32 : vector<1x8x1xf32>
    %34 = arith.subf %10, %8 : vector<1x1x256xf32>
    %35 = arith.subf %11, %9 : vector<1x1x256xf32>
    %36 = arith.mulf %34, %35 : vector<1x1x256xf32>
    %37 = vector.broadcast %33 : vector<1x8x1xf32> to vector<1x8x256xf32>
    %38 = vector.broadcast %36 : vector<1x1x256xf32> to vector<1x8x256xf32>
    %39 = arith.addf %37, %38 : vector<1x8x256xf32>
    %40 = arith.subf %39, %30 : vector<1x8x256xf32>
    %cst_6 = arith.constant 0.000000e+00 : f32
    %41 = vector.broadcast %cst_6 : f32 to vector<1x8x256xf32>
    %42 = arith.cmpf ogt, %30, %41 : vector<1x8x256xf32>
    %43 = arith.divf %30, %40 : vector<1x8x256xf32>
    %cst_7 = arith.constant 0.000000e+00 : f32
    %44 = vector.broadcast %cst_7 : f32 to vector<1x8x256xf32>
    %45 = arith.select %42, %43, %44 : vector<1x8x256xi1>, vector<1x8x256xf32>
    %cst_8 = arith.constant dense<0xFF800000> : vector<1x256xf32>
    %46 = vector.multi_reduction <maximumf>, %45, %cst_8 [1] : vector<1x8x256xf32> to vector<1x256xf32>
    %47 = vector.shape_cast %46 : vector<1x256xf32> to vector<1x1x256xf32>
    %48 = vector.broadcast %47 : vector<1x1x256xf32> to vector<1x8x256xf32>
    %49 = arith.cmpf oeq, %45, %48 : vector<1x8x256xf32>
    %50 = tpu.iota {dimensions = array<i32: 1>} : vector<1x8x256xi32>
    %c8_i32 = arith.constant 8 : i32
    %51 = vector.broadcast %c8_i32 : i32 to vector<1x8x256xi32>
    %52 = arith.shli %50, %51 : vector<1x8x256xi32>
    %53 = vector.broadcast %7 : vector<1x8x1xi32> to vector<1x8x256xi32>
    %54 = arith.ori %52, %53 : vector<1x8x256xi32>
    %c1073741824_i32 = arith.constant 1073741824 : i32
    %55 = vector.broadcast %c1073741824_i32 : i32 to vector<1x8x256xi32>
    %56 = arith.select %49, %54, %55 : vector<1x8x256xi1>, vector<1x8x256xi32>
    %cst_9 = arith.constant dense<2147483647> : vector<1x256xi32>
    %57 = vector.multi_reduction <minsi>, %56, %cst_9 [1] : vector<1x8x256xi32> to vector<1x256xi32>
    %58 = vector.shape_cast %57 : vector<1x256xi32> to vector<1x1x256xi32>
    %c8_i32_10 = arith.constant 8 : i32
    %59 = vector.broadcast %c8_i32_10 : i32 to vector<1x1x256xi32>
    %60 = arith.shrsi %58, %59 : vector<1x1x256xi32>
    %c255_i32 = arith.constant 255 : i32
    %61 = vector.broadcast %c255_i32 : i32 to vector<1x1x256xi32>
    %62 = arith.andi %58, %61 : vector<1x1x256xi32>
    %cst_11 = arith.constant 5.000000e-01 : f32
    %63 = vector.broadcast %cst_11 : f32 to vector<1x1x256xf32>
    %64 = arith.cmpf oge, %47, %63 : vector<1x1x256xf32>
    %cst_12 = arith.constant 3.000000e-01 : f32
    %65 = vector.broadcast %cst_12 : f32 to vector<1x1x256xf32>
    %66 = arith.cmpf oge, %47, %65 : vector<1x1x256xf32>
    %c-1_i32 = arith.constant -1 : i32
    %c0_i32 = arith.constant 0 : i32
    %67 = vector.broadcast %c-1_i32 : i32 to vector<1x1x256xi32>
    %68 = vector.broadcast %c0_i32 : i32 to vector<1x1x256xi32>
    %69 = arith.select %66, %67, %68 : vector<1x1x256xi1>, vector<1x1x256xi32>
    %c1_i32 = arith.constant 1 : i32
    %70 = vector.broadcast %c1_i32 : i32 to vector<1x1x256xi32>
    %71 = arith.select %64, %70, %69 : vector<1x1x256xi1>, vector<1x1x256xi32>
    %c0_i32_13 = arith.constant 0 : i32
    %72 = vector.broadcast %c0_i32_13 : i32 to vector<1x1x256xi32>
    %73 = arith.cmpi eq, %71, %72 : vector<1x1x256xi32>
    %c-1_i32_14 = arith.constant -1 : i32
    %74 = vector.broadcast %c-1_i32_14 : i32 to vector<1x1x256xi32>
    %75 = arith.cmpi eq, %71, %74 : vector<1x1x256xi32>
    %c-1_i32_15 = arith.constant -1 : i32
    %76 = vector.broadcast %c-1_i32_15 : i32 to vector<1x1x256xi32>
    %77 = arith.select %75, %76, %62 : vector<1x1x256xi1>, vector<1x1x256xi32>
    %c20_i32 = arith.constant 20 : i32
    %78 = vector.broadcast %c20_i32 : i32 to vector<1x1x256xi32>
    %79 = arith.select %73, %78, %77 : vector<1x1x256xi1>, vector<1x1x256xi32>
    %c10_i32 = arith.constant 10 : i32
    %80 = vector.broadcast %c10_i32 : i32 to vector<1x1x256xi32>
    %81 = arith.shli %60, %80 : vector<1x1x256xi32>
    %c1_i32_16 = arith.constant 1 : i32
    %82 = vector.broadcast %c1_i32_16 : i32 to vector<1x1x256xi32>
    %83 = arith.addi %71, %82 : vector<1x1x256xi32>
    %c8_i32_17 = arith.constant 8 : i32
    %84 = vector.broadcast %c8_i32_17 : i32 to vector<1x1x256xi32>
    %85 = arith.shli %83, %84 : vector<1x1x256xi32>
    %86 = arith.ori %81, %85 : vector<1x1x256xi32>
    %c1_i32_18 = arith.constant 1 : i32
    %87 = vector.broadcast %c1_i32_18 : i32 to vector<1x1x256xi32>
    %88 = arith.addi %79, %87 : vector<1x1x256xi32>
    %89 = arith.ori %86, %88 : vector<1x1x256xi32>
    %c0_19 = arith.constant 0 : index
    %c0_20 = arith.constant 0 : index
    %c0_21 = arith.constant 0 : index
    %90 = vector.load %arg4[%c0_19, %c0_20, %c0_21] : memref<1x1x256xi32, #tpu.memory_space<vmem>>, vector<1x1x256xi32>
    tpu.vector_store %arg4[%c0_19, %c0_20, %c0_21], %89 {strides = array<i32>} : memref<1x1x256xi32, #tpu.memory_space<vmem>>, vector<1x1x256xi32>,
    return
  }
  func.func @transform_0(%arg0: i32, %arg1: i32) -> (i32, i32, i32) {
    %c0_i32 = arith.constant 0 : i32
    %c0_i32_0 = arith.constant 0 : i32
    %c0_i32_1 = arith.constant 0 : i32
    return %arg0, %c0_i32, %c0_i32_0 : i32, i32, i32
  }
  func.func @transform_1(%arg0: i32, %arg1: i32) -> (i32, i32, i32) {
    %c0_i32 = arith.constant 0 : i32
    %c0_i32_0 = arith.constant 0 : i32
    return %arg0, %c0_i32, %arg1 : i32, i32, i32
  }
  func.func @transform_2(%arg0: i32, %arg1: i32) -> (i32, i32, i32) {
    %c0_i32 = arith.constant 0 : i32
    %c0_i32_0 = arith.constant 0 : i32
    return %arg0, %c0_i32, %arg1 : i32, i32, i32
  }
}

</mosaic_0001>

<bundles_post_ra>
// kernel: roi_heads_label_proposals.1
= control target key start
LH: loop header
LB: loop body
LE: loop exit
PB: predicated region body
PF: predicated region fallthrough
CT: control target
= control target key end

     0   :  { %s652_s9 = smov 0   ;;  %s654_s10 = smov 0   ;;  %s709_s0 = inlined_call_operand.vmem [shape: f32[2,8,5], index: 0, kind: input, shape index: {}]   ;;  %s710_s1 = inlined_call_operand.vmem [shape: f32[2,4,256], index: 1, kind: input, shape index: {}]   ;;  %s711_s2 = inlined_call_operand.vmem [shape: s32[2,1,256], index: 2, kind: output, shape index: {}]  }
   0x1   :  { %s656_s11 = smov 0  }
   0x2 LB: > { %s24_s12 = sadd.s32 1, %s623_s10  ;;  %p552_p0 = scmp.ge.s32.totalorder %s627_s11, 1  ;;  %s627_s11 = sphi %s656_s11, %s12_s11   ;;  %s623_s10 = sphi %s654_s10, %s713_s10   ;;  %s619_s9 = sphi %s652_s9, %s712_s9  }
   0x3   : > { %p26_p1 = scmp.ge.s32.totalorder %s24_s12, 2  ;;  %p142_p2 = scmp.lt.s32.totalorder %s627_s11, 3 }
   0x5   : > { %s715_s12 = smov (%p26_p1, %s24_s12), 0  ;;  %p143_p3 = pnand %p552_p0, %p142_p2 }
   0x6   : > { %p175_p4 = scmp.lt.s32.totalorder (!%p143_p3), %s619_s9, 1  ;;  %v629_v0 = vmov (!%p143_p3), 2   ;;  %v630_v1 = vmov (!%p143_p3), 3   ;;  %s631_s17 = smov (!%p143_p3), 2   ;;  %v632_v3 = vmov (!%p143_p3), 0   ;;  %v633_v4 = vmov (!%p143_p3), 1  }
   0x7   : > { %146 = sbr.rel (%p143_p3) target bundleno = 440 (0x1b8), region = 28  ;;  %595 = vset.pattern.permute.xlu1 (!%p143_p3), %v629_v0  ;;  %597 = vset.pattern.permute.xlu0 (!%p143_p3), %v630_v1  ;;  %s634_s18 = smov (!%p143_p3), 127   ;;  %v635_v9 = vmov (!%p143_p3), 4   ;;  %v207_v12 = vlaneseq (!%p143_p3) }
   0x9   : > { %v678_v13 = vshrl.u32 (!%p143_p3), %v207_v12, 7 }
   0xb   : > { %v209_v16 = vsub.s32 (!%p143_p3), 2, %v678_v13  ;;  %v213_v17 = vsub.s32 (!%p143_p3), 6, %v678_v13  ;;  %v233_v18 = vsub.s32 (!%p143_p3), 0, %v678_v13  ;;  %v237_v19 = vsub.s32 (!%p143_p3), 4, %v678_v13 }
   0xc   : > { %v285_v21 = vsub.s32 (!%p143_p3), 1, %v678_v13  ;;  %v289_v22 = vsub.s32 (!%p143_p3), 5, %v678_v13  ;;  %v261_v23 = vsub.s32 (!%p143_p3), 3, %v678_v13  ;;  %v265_v24 = vsub.s32 (!%p143_p3), 7, %v678_v13 }
   0xe   : > { %s717_s9 = smov (!%p175_p4, %s619_s9), 1 }
   0xf   : > { %s553_s13 = sshll.u32 %s717_s9, 3  ;;  %s556_s22 = sshll.u32 %s717_s9, 1 }
  0x10   : > { %s178_s16 = scalar_lea.vmem %s709_s0, %s553_s13  ;;  %s187_s21 = scalar_lea.vmem %s710_s1, %s553_s13 }
  0x11   : > { %v198_v2 = vld [vmem:[%s178_s16] sm:$0xff]  ;;  %s196_s25 = scalar_lea.vmem %s711_s2, %s556_s22 }
  0x12   : > { %309 = vrot.lane.b32.xlu0 %v198_v2, %s631_s17  ;;  %203 = vperm.xlu1 %595, %v198_v2   ;;  %v561_v7 = vtrunc.f32 %v198_v2  ;;  %v199_v15 = vld [vmem:[%s187_s21] sm:$0xff] }
  0x13   : > { %v318_v20 = vrot.slane %v199_v15, 6  ;;  %v210_v25 = vrot.slane %v199_v15, %v209_v16  ;;  %v214_v26 = vrot.slane %v199_v15, %v213_v17  ;;  %v234_v27 = vrot.slane %v199_v15, %v233_v18 }
  0x14   : > { %v562_v8 = vcvt.f32.s32 %v561_v7  ;;  %v238_v28 = vrot.slane %v199_v15, %v237_v19  ;;  %v286_v31 = vrot.slane %v199_v15, %v285_v21  ;;  %v290_v32 = vrot.slane %v199_v15, %v289_v22 }
  0x15   : > { %v320_v30 = vsub.f32 %v199_v15, %v318_v20  ;;  %v262_v33 = vrot.slane %v199_v15, %v261_v23  ;;  %v266_v34 = vrot.slane %v199_v15, %v265_v24  ;;  %v220_v35 = vrot.slane %v210_v25, %v209_v16 }
  0x16   : > { %596 = vset.pattern.permute.xlu1 %v632_v3  ;;  %v224_v36 = vrot.slane %v214_v26, %v209_v16  ;;  %v244_v37 = vrot.slane %v234_v27, %v233_v18  ;;  %v248_v38 = vrot.slane %v238_v28, %v233_v18  ;;  %v296_v40 = vrot.slane %v286_v31, %v285_v21 }
  0x17   : > { %228 = vperm.xlu1 %596, %v198_v2   ;;  %v557_v39 = vrot.slane %v320_v30, 9  ;;  %v300_v41 = vrot.slane %v290_v32, %v285_v21  ;;  %v272_v42 = vrot.slane %v262_v33, %v261_v23  ;;  %v276_v43 = vrot.slane %v266_v34, %v261_v23 }
  0x18   : > { %v378_v26 = vshll.u32 %v678_v13, 8 }
  0x19   : > { %v325_v50 = vmul.f32 %v557_v39, %v320_v30 }
  0x1b   : > { %598 = vset.pattern.permute.xlu1 %v633_v4  ;;  %v335_v59 = vrot.slane %v325_v50, %v209_v16  ;;  %v339_v60 = vrot.slane %v325_v50, %v213_v17 }
  0x1c   : > { %280 = vperm.xlu1 %598, %v198_v2  }
  0x1d   : > { %v345_v1 = vrot.slane %v335_v59, %v209_v16 }
  0x20   : > { %599 = vset.pattern.permute.xlu1 %v629_v0 }
  0x84   : > { %v310_v5 = vpop.permute.xlu0 %309 }
  0x85   : > { %v312_v6 = vsub.f32 %v198_v2, %v310_v5 }
  0x87   : > { %314 = vrot.lane.b32.xlu0 %v312_v6, %s634_s18 }
  0x8b   : > { %256 = vperm.xlu0 %597, %v198_v2   ;;  %v349_v2 = vrot.slane %v339_v60, %v209_v16 }
  0x8f   : > { %600 = vset.pattern.permute.xlu0 %v635_v9 }
  0x90   : > { %380 = vperm.xlu0 %600, %v562_v8  }
  0x91   : > { %v204_v14 = vpop.permute.xlu1 %203 }
  0x92   : > { %v225_v46 = vmin.f32 %v204_v14, %v220_v35  ;;  %v226_v47 = vmin.f32 %v204_v14, %v224_v36 }
  0x96   : > { %v229_v29 = vpop.permute.xlu1 %228 }
  0x97   : > { %v249_v48 = vmax.f32 %v229_v29, %v244_v37  ;;  %v250_v49 = vmax.f32 %v229_v29, %v248_v38 }
  0x99   : > { %v251_v55 = vsub.f32 %v225_v46, %v249_v48  ;;  %v252_v56 = vsub.f32 %v226_v47, %v250_v49 }
  0x9b   : > { %v281_v44 = vpop.permute.xlu1 %280  ;;  %v253_v61 = vmax.f32 %v251_v55, 0.0  ;;  %v254_v62 = vmax.f32 %v252_v56, 0.0 }
  0x9c   : > { %v301_v51 = vmax.f32 %v281_v44, %v296_v40  ;;  %v302_v52 = vmax.f32 %v281_v44, %v300_v41 }
  0xf9   : > { %v315_v10 = vpop.permute.xlu0 %314 }
  0xfa   : > { %v317_v11 = vmul.f32 %v315_v10, %v312_v6 }
  0xfc   : > { %328 = vperm.xlu1 %599, %v317_v11  }
 0x10a   : > { %v257_v45 = vpop.permute.xlu0 %256 }
 0x10b   : > { %v277_v53 = vmin.f32 %v257_v45, %v272_v42  ;;  %v278_v54 = vmin.f32 %v257_v45, %v276_v43  ;;  %v636_v45 = vmov 1966171168  }
 0x10c   : > { %v437_v46 = vunpack.c.l.s4 %v636_v45 }
 0x10d   : > { %v303_v57 = vsub.f32 %v277_v53, %v301_v51  ;;  %v304_v58 = vsub.f32 %v278_v54, %v302_v52 }
 0x10e   : > { %v438_v54 = vunpack.c.0.s8 %v437_v46 }
 0x10f   : > { %v305_v63 = vmax.f32 %v303_v57, 0.0  ;;  %v306_v0 = vmax.f32 %v304_v58, 0.0  ;;  %v381_v28 = vpop.permute.xlu0 %380 }
 0x110   : > { %v382_v32 = vor.u32 %v381_v28, %v378_v26 }
 0x111   : > { %v307_v5 = vmul.f32 %v305_v63, %v253_v61  ;;  %v308_v6 = vmul.f32 %v306_v0, %v254_v62 }
 0x113   : > { %vm354_vm0 = vcmp.gt.f32.partialorder %v307_v5, 0.0  ;;  %vm355_vm1 = vcmp.gt.f32.partialorder %v308_v6, 0.0 }
 0x17b   : > { %v329_v4 = vpop.permute.xlu1 %328 }
 0x17c   : > { %v350_v7 = vadd.f32 %v345_v1, %v329_v4  ;;  %v351_v8 = vadd.f32 %v349_v2, %v329_v4 }
 0x17e   : > { %v352_v9 = vsub.f32 %v350_v7, %v307_v5  ;;  %v353_v10 = vsub.f32 %v351_v8, %v308_v6 }
 0x180   : > { %601 = vrcp.f32 %v352_v9 }
 0x181   : > { %603 = vrcp.f32 %v353_v10  ;;  %v441_v10 = vsub.s32 %v438_v54, %v678_v13 }
 0x18a   : > { %v602_v11 = vpop.eup %601 }
 0x18b   : > { %v604_v14 = vpop.eup %603  ;;  %v357_v15 = vmul.f32 %v602_v11, %v307_v5 }
 0x18c   : > { %v359_v17 = vmul.f32 %v604_v14, %v308_v6 }
 0x18d   : > { %v360_v18 = vsel %vm354_vm0, %v357_v15, 0.0 }
 0x18e   : > { %v361_v19 = vsel %vm355_vm1, %v359_v17, 0.0  ;;  %v362_v20 = vrot.slane %v360_v18, 4 }
 0x18f   : > { %v368_v21 = vrot.slane %v361_v19, 4 }
 0x190   : > { %v363_v16 = vmax.f32 %v360_v18, %v362_v20 }
 0x191   : > { %v369_v22 = vmax.f32 %v361_v19, %v368_v21 }
 0x192   : > { %v364_v23 = vrot.slane %v363_v16, 2 }
 0x193   : > { %v370_v24 = vrot.slane %v369_v22, 2 }
 0x194   : > { %v365_v25 = vmax.f32 %v363_v16, %v364_v23 }
 0x195   : > { %v371_v27 = vmax.f32 %v369_v22, %v370_v24 }
 0x196   : > { %v366_v29 = vrot.slane %v365_v25, 1 }
 0x197   : > { %v372_v30 = vrot.slane %v371_v27, 1 }
 0x198   : > { %v367_v31 = vmax.f32 %v365_v25, %v366_v29 }
 0x199   : > { %v373_v33 = vmax.f32 %v371_v27, %v372_v30 }
 0x19a   : > { %vm374_vm2 = vcmp.eq.f32.partialorder %v360_v18, %v367_v31  ;;  %vm409_vm4 = vcmp.ge.f32.partialorder %v367_v31, 0.3  ;;  %vm407_vm8 = vcmp.ge.f32.partialorder %v367_v31, 0.5 }
 0x19b   : > { %vm375_vm3 = vcmp.eq.f32.partialorder %v361_v19, %v373_v33  ;;  %v383_v34 = vsel %vm374_vm2, %v382_v32, 1073741824  ;;  %vm410_vm5 = vcmp.ge.f32.partialorder %v373_v33, 0.3  ;;  %v411_v39 = vsel %vm409_vm4, 4294967295, %v632_v3 }
 0x19c   : > { %v384_v35 = vsel %vm375_vm3, %v382_v32, 1073741824  ;;  %v385_v36 = vrot.slane %v383_v34, 4  ;;  %vm408_vm9 = vcmp.ge.f32.partialorder %v373_v33, 0.5  ;;  %v412_v42 = vsel %vm410_vm5, 4294967295, %v632_v3 }
 0x19d   : > { %v394_v37 = vrot.slane %v384_v35, 4  ;;  %v413_v44 = vsel %vm407_vm8, 1, %v411_v39  ;;  %v414_v48 = vsel %vm408_vm9, 1, %v412_v42  ;;  %vm452_vm2 = vcmp.lt.s32.totalorder %v207_v12, 256 }
 0x19e   : > { %vm386_vm6 = vcmp.lt.s32.totalorder %v383_v34, %v385_v36  ;;  %v425_v52 = vadd.s32 1, %v413_v44  ;;  %v426_v53 = vadd.s32 1, %v414_v48  ;;  %vm415_vm14 = vcmp.eq.s32.totalorder %v413_v44, 0 }
 0x19f   : > { %v387_v38 = vsel %vm386_vm6, %v383_v34, %v385_v36  ;;  %vm395_vm7 = vcmp.lt.s32.totalorder %v384_v35, %v394_v37  ;;  %vm416_vm15 = vcmp.eq.s32.totalorder %v414_v48, 0  ;;  %vm417_vm0 = vcmp.eq.s32.totalorder %v413_v44, 4294967295 }
 0x1a0   : > { %v388_v40 = vrot.slane %v387_v38, 2  ;;  %v396_v41 = vsel %vm395_vm7, %v384_v35, %v394_v37  ;;  %vm418_vm1 = vcmp.eq.s32.totalorder %v414_v48, 4294967295  ;;  %v427_v60 = vshll.u32 %v425_v52, 8 }
 0x1a1   : > { %v397_v43 = vrot.slane %v396_v41, 2  ;;  %v428_v63 = vshll.u32 %v426_v53, 8 }
 0x1a2   : > { %vm389_vm10 = vcmp.lt.s32.totalorder %v387_v38, %v388_v40 }
 0x1a3   : > { %v390_v47 = vsel %vm389_vm10, %v387_v38, %v388_v40  ;;  %vm398_vm11 = vcmp.lt.s32.totalorder %v396_v41, %v397_v43 }
 0x1a4   : > { %v391_v49 = vrot.slane %v390_v47, 1  ;;  %v399_v50 = vsel %vm398_vm11, %v396_v41, %v397_v43 }
 0x1a5   : > { %v400_v51 = vrot.slane %v399_v50, 1 }
 0x1a6   : > { %vm392_vm12 = vcmp.lt.s32.totalorder %v390_v47, %v391_v49 }
 0x1a7   : > { %v393_v55 = vsel %vm392_vm12, %v390_v47, %v391_v49  ;;  %vm401_vm13 = vcmp.lt.s32.totalorder %v399_v50, %v400_v51 }
 0x1a8   : > { %v402_v56 = vsel %vm401_vm13, %v399_v50, %v400_v51  ;;  %v403_v3 = vshra.s32 %v393_v55, 8  ;;  %v405_v57 = vand.u32 255, %v393_v55 }
 0x1a9   : > { %v404_v58 = vshra.s32 %v402_v56, 8  ;;  %v406_v59 = vand.u32 255, %v402_v56 }
 0x1aa   : > { %v419_v61 = vsel %vm417_vm0, 4294967295, %v405_v57  ;;  %v423_v62 = vshll.u32 %v403_v3, 10 }
 0x1ab   : > { %v420_v0 = vsel %vm418_vm1, 4294967295, %v406_v59  ;;  %v421_v1 = vsel %vm415_vm14, 20, %v419_v61  ;;  %v424_v2 = vshll.u32 %v404_v58, 10 }
 0x1ac   : > { %v422_v4 = vsel %vm416_vm15, 20, %v420_v0  ;;  %v429_v5 = vor.u32 %v427_v60, %v423_v62  ;;  %v431_v6 = vadd.s32 1, %v421_v1 }
 0x1ad   : > { %v430_v7 = vor.u32 %v428_v63, %v424_v2  ;;  %v432_v8 = vadd.s32 1, %v422_v4 }
 0x1ae   : > { %v433_v9 = vor.u32 %v431_v6, %v429_v5 }
 0x1af   : > { %v434_v11 = vor.u32 %v432_v8, %v430_v7 }
 0x1b1   : > { %v435_v14 = vcombine.low %v433_v9, %v434_v11 }
 0x1b3   : > { %v442_v15 = vrot.slane %v435_v14, %v441_v10 }
 0x1b5   : > { %v449_v17 = vrot.slane %v442_v15, %v441_v10 }
 0x1b7   : > { %454 = vst.msk [vmem:[%s196_s25] sm:$0x3] %vm452_vm2, %v449_v17 }
 0x1b8 PF: > { %s12_s11 = sadd.s32 1, %s627_s11   ;;  %s712_s9 = smov %s623_s10 }
 0x1b9   : > { %p9_p5 = scmp.ge.s32.totalorder %s12_s11, 4   ;;  %s713_s10 = smov %s715_s12 }
 0x1bb   :  { %11 = sbr.rel (!%p9_p5) target bundleno = 2 (0x2), region = 61 }

</bundles_post_ra>
